<compile_context>
chip_gen: v7x
topology: tpu7x:2x2x1
jax: 0.10.0
libtpu: 0.0.40
codegen_flags: <defaults>
</compile_context>

<pallas_src>
import functools
import math

import jax
import jax.numpy as jnp
import numpy as np
from jax import lax
from jax.experimental import pallas as pl
from jax.experimental.pallas import tpu as pltpu


# ----------------------------- Kernel 1: fused QKV projection ----------------


def _qkv_proj_kernel(x_ref, w_ref, b_ref, q_ref, k_ref, v_ref, *, hidden,
                     matmul_dtype):
  x = x_ref[...]
  w = w_ref[...]
  if matmul_dtype is not None:            # bf16 operands, f32 accumulation
    x = x.astype(matmul_dtype)
    w = w.astype(matmul_dtype)
  y = jnp.dot(x, w, preferred_element_type=jnp.float32) + b_ref[...]
  q_ref[...] = y[:, :hidden].astype(q_ref.dtype)
  k_ref[...] = y[:, hidden:2 * hidden].astype(k_ref.dtype)
  v_ref[...] = y[:, 2 * hidden:].astype(v_ref.dtype)


# --------------------------- Kernel 2: windowed attention --------------------


def _windowed_attn_kernel(q_ref, k_hbm, v_hbm, o_ref, kw_ref, vw_ref, sem, *,
                          num_heads, head_dim, window, block_q, approx_recip):
  b = pl.program_id(0)
  i = pl.program_id(1)
  num_i = pl.num_programs(1)
  win = block_q + 2 * window

  def start_fetch(blk, slot):
    # Padded K/V rows for query block `blk`: [blk*block_q, blk*block_q + win).
    start = blk * block_q
    pltpu.make_async_copy(k_hbm.at[b, pl.ds(start, win), :],
                          kw_ref.at[slot], sem.at[0, slot]).start()
    pltpu.make_async_copy(v_hbm.at[b, pl.ds(start, win), :],
                          vw_ref.at[slot], sem.at[1, slot]).start()

  slot = i % 2

  # Each batch element starts its own prefetch chain (safe under megacore
  # splits of the "parallel" batch axis; the q-block axis is "arbitrary" and
  # therefore sequential per core).
  @pl.when(i == 0)
  def _():
    start_fetch(0, 0)

  # Prefetch the next block's window into the other slot *before* waiting on
  # the current one, so the DMA overlaps both this wait and this step's
  # compute.  The last block of a batch issues no prefetch.
  @pl.when(i + 1 < num_i)
  def _():
    start_fetch(i + 1, 1 - slot)

  # Wait for the current window (started here if i == 0, else by step i-1).
  cur = i * block_q
  pltpu.make_async_copy(k_hbm.at[b, pl.ds(cur, win), :], kw_ref.at[slot],
                        sem.at[0, slot]).wait()
  pltpu.make_async_copy(v_hbm.at[b, pl.ds(cur, win), :], vw_ref.at[slot],
                        sem.at[1, slot]).wait()

  q = q_ref[0]                                     # (block_q, E)
  k = kw_ref[slot]                                 # (win, E)
  v = vw_ref[slot]                                 # (win, E)

  qh = q.reshape(block_q, num_heads, head_dim)
  kh = k.reshape(win, num_heads, head_dim)
  vh = v.reshape(win, num_heads, head_dim)

  # Banded score tile for all heads at once: (H, block_q, win), f32 accum.
  s = jnp.einsum('qhd,khd->hqk', qh, kh, preferred_element_type=jnp.float32)

  # In-band iff local key column j lies in [r, r + 2w] for query row r.
  r = lax.broadcasted_iota(jnp.int32, (block_q, win), 0)
  j = lax.broadcasted_iota(jnp.int32, (block_q, win), 1)
  in_band = (j >= r) & (j <= r + 2 * window)
  s = jnp.where(in_band[None, :, :], s, -1e30)

  # Softmax over the band in f32, with DEFERRED normalization: the
  # unnormalized exp() feeds the PV matmul and only the (block_q, H, D)
  # output is scaled by 1/l.  In-band out-of-range keys score exactly 0
  # (zero-padded K) and participate -> padding_value=0 semantics; padded V
  # rows are exactly zero so they contribute nothing to PV.
  m = jnp.max(s, axis=-1, keepdims=True)           # (H, block_q, 1)
  e = jnp.exp(s - m)                               # (H, block_q, win)
  l = jnp.sum(e, axis=-1)                          # (H, block_q)

  o = jnp.einsum('hqk,khd->qhd', e.astype(vh.dtype), vh,
                 preferred_element_type=jnp.float32)   # (block_q, H, D)
  # approx=True moves the divide onto the otherwise-idle EUP (used on the
  # bf16 path); the f32 path stays exact so the strict check holds.
  inv_l = pl.reciprocal(l, approx=approx_recip)    # (H, block_q)
  o = o * jnp.transpose(inv_l)[:, :, None]         # broadcast over D

  # Lane-dense store: full (block_q, E) tile, heads head-major.
  o_ref[0] = o.reshape(block_q, num_heads * head_dim).astype(o_ref.dtype)


# ----------------------------------- helpers ---------------------------------


def _pick_rows_block(n, target):
  """Largest divisor of n <= target, preferring multiples of 128 then 8."""
  if n <= target:
    return n
  for pref in (128, 8):
    for cand in range(target, pref - 1, -1):
      if cand % pref == 0 and n % cand == 0:
        return cand
  # Pathological row count with no 8-aligned divisor <= target; fall back to
  # the full extent (the kernel-1 vmem_limit scales with this choice).
  return n


def _attn_vmem_bytes(block_q, hidden, num_heads, window, cbytes):
  """Working-set estimate for kernel 2 (includes the f32 score slabs)."""
  win = block_q + 2 * window
  return (2 * block_q * hidden * cbytes        # double-buffered q tiles
          + 2 * block_q * hidden * 4           # double-buffered out tiles
          + 2 * 2 * win * hidden * cbytes      # double-buffered K/V windows
          + 3 * num_heads * block_q * win * 4  # f32 score / exp intermediates
          + block_q * hidden * 4)              # f32 PV accumulator


def _choose_block_q(seq, hidden, num_heads, window, cbytes, budget):
  """block_q: divisor of seq, multiple of 8, prefer multiples of 128, that
  keeps the kernel-2 working set under `budget` bytes (v7x-safe)."""
  cands = [d for d in range(min(seq, 512), 7, -1)
           if seq % d == 0 and d % 8 == 0]
  if seq <= 512 and seq not in cands:
    cands.insert(0, seq)
  if not cands:
    cands = [seq]
  ordered = ([d for d in cands if d % 128 == 0] +
             [d for d in cands if d % 128 != 0])
  for d in ordered:
    if _attn_vmem_bytes(d, hidden, num_heads, window, cbytes) <= budget:
      return d
  return cands[-1]


# ----------------------------------- wrapper ---------------------------------


def longformer_local_attention(x, params, *, num_heads, attention_window,
                               block_q=None, matmul_dtype=jnp.bfloat16):
  """x: (B, S, E). Returns (attention, attention) like the module."""
  B, S, E = x.shape
  D = E // num_heads
  w = attention_window
  wq, bq, wk, bk, wv, bv = params

  compute_dtype = x.dtype if matmul_dtype is None else jnp.dtype(matmul_dtype)
  cbytes = jnp.dtype(compute_dtype).itemsize

  # Fold 1/sqrt(D) into the query projection (in f32) and fuse Q/K/V into one
  # matmul; the resident weight is stored in the MXU compute dtype.
  scale = 1.0 / math.sqrt(D)
  w_qkv = jnp.concatenate([wq * scale, wk, wv], axis=1)            # (E, 3E)
  if matmul_dtype is not None:
    w_qkv = w_qkv.astype(matmul_dtype)
  b_qkv = jnp.concatenate([bq * scale, bk, bv]).reshape(1, 3 * E)
  b_qkv = b_qkv.astype(jnp.float32)                                # f32 bias add

  # ---- Kernel 1: fused QKV projection, tiled over rows of x. ----
  rows = B * S
  bm = _pick_rows_block(rows, 512)
  wbytes = jnp.dtype(w_qkv.dtype).itemsize
  xbytes = jnp.dtype(x.dtype).itemsize
  need1 = (wbytes * E * 3 * E + 4 * 3 * E        # resident weight + bias
           + 2 * xbytes * bm * E                 # double-buffered x tiles
           + 2 * 3 * cbytes * bm * E             # double-buffered q/k/v tiles
           + 4 * bm * 3 * E)                     # f32 accumulator
  vmem1 = int(min(max(need1 * 3 // 2, 16 << 20), 64 << 20))

  q, k, v = pl.pallas_call(
      functools.partial(_qkv_proj_kernel, hidden=E, matmul_dtype=matmul_dtype),
      out_shape=[jax.ShapeDtypeStruct((rows, E), compute_dtype)] * 3,
      grid_spec=pltpu.PrefetchScalarGridSpec(
          num_scalar_prefetch=0,
          grid=(rows // bm,),
          in_specs=[
              pl.BlockSpec((bm, E), lambda i: (i, 0)),
              pl.BlockSpec((E, 3 * E), lambda i: (0, 0)),
              pl.BlockSpec((1, 3 * E), lambda i: (0, 0)),
          ],
          out_specs=[pl.BlockSpec((bm, E), lambda i: (i, 0))] * 3,
      ),
      compiler_params=pltpu.CompilerParams(
          dimension_semantics=("parallel",),
          vmem_limit_bytes=vmem1),
  )(x.reshape(rows, E), w_qkv, b_qkv)

  q = q.reshape(B, S, E)
  k = k.reshape(B, S, E)
  v = v.reshape(B, S, E)

  # Zero-pad K/V by w rows on each side (in the halved bf16 storage dtype) so
  # padded keys score exactly 0 and padded values contribute 0.
  k_pad = jnp.pad(k, ((0, 0), (w, w), (0, 0)))
  v_pad = jnp.pad(v, ((0, 0), (w, w), (0, 0)))

  vmem_budget = 40 << 20                         # v7x-safe working-set target
  if block_q is None:
    block_q = _choose_block_q(S, E, num_heads, w, cbytes, vmem_budget)
  assert S % block_q == 0, "block_q must divide the sequence length"
  win = block_q + 2 * w

  need2 = _attn_vmem_bytes(block_q, E, num_heads, w, cbytes)
  vmem2 = int(min(max(need2 * 13 // 10, 16 << 20), 64 << 20))

  kernel = functools.partial(
      _windowed_attn_kernel, num_heads=num_heads, head_dim=D, window=w,
      block_q=block_q, approx_recip=(matmul_dtype is not None))

  # TODO(synk): if B == 1 and S//block_q is tiny, add a head-group grid axis
  # so both v7x TensorCores are fed.
  out = pl.pallas_call(
      kernel,
      out_shape=jax.ShapeDtypeStruct((B, S, E), x.dtype),
      grid_spec=pltpu.PrefetchScalarGridSpec(
          num_scalar_prefetch=0,
          grid=(B, S // block_q),
          in_specs=[
              pl.BlockSpec((1, block_q, E), lambda b, i: (b, i, 0)),  # q tile
              pl.BlockSpec(memory_space=pl.ANY),                      # k_pad
              pl.BlockSpec(memory_space=pl.ANY),                      # v_pad
          ],
          out_specs=pl.BlockSpec((1, block_q, E), lambda b, i: (b, i, 0)),
          scratch_shapes=[
              pltpu.VMEM((2, win, E), compute_dtype),   # K window, 2 slots
              pltpu.VMEM((2, win, E), compute_dtype),   # V window, 2 slots
              pltpu.SemaphoreType.DMA((2, 2)),          # [k/v, slot]
          ],
      ),
      compiler_params=pltpu.CompilerParams(
          dimension_semantics=("parallel", "arbitrary"),
          vmem_limit_bytes=vmem2),
  )(q, k_pad, v_pad)
  # Module returns (attention, attention) when output_attentions=False.
  return out, out


# --------------------------------- reference ---------------------------------


def _reference(x, params, *, num_heads, attention_window):
  """Pure-JAX reference of the same semantics (for validation)."""
  B, S, E = x.shape
  D = E // num_heads
  w = attention_window
  wq, bq, wk, bk, wv, bv = params
  q = (x @ wq + bq) / math.sqrt(D)
  k = x @ wk + bk
  v = x @ wv + bv
  q = q.reshape(B, S, num_heads, D)
  k = k.reshape(B, S, num_heads, D)
  v = v.reshape(B, S, num_heads, D)
  s_full = jnp.einsum('bihd,bjhd->bhij', q, k)        # (B, H, S, S)
  idx = jnp.arange(S)
  diff = idx[None, :] - idx[:, None]                  # (S, S)
  band_mask = jnp.stack([(diff == (jj - w)) for jj in range(2 * w + 1)],
                        axis=0).astype(jnp.float32)   # (2w+1, S, S)
  band = jnp.einsum('bhij,cij->bhic', s_full, band_mask)  # (B, H, S, 2w+1)
  p = jax.nn.softmax(band, axis=-1)
  p_full = jnp.einsum('bhic,cij->bhij', p, band_mask)
  out = jnp.einsum('bhij,bjhd->bihd', p_full, v)
  return out.reshape(B, S, E)


if __name__ == "__main__":
  # Small config: batch=2, seq=16, hidden=32, heads=4 (head_dim=8), window=2.
  B, S, E, H = 2, 16, 32, 4
  attention_window = 2

  key = jax.random.PRNGKey(0)
  keys = jax.random.split(key, 8)
  x = jax.random.normal(keys[0], (B, S, E), dtype=jnp.float32)

  def init_linear(kw, kb):
    # Deterministic init (uniform, like nn.Linear default bound). Weight is
    # stored pre-transposed as (E_in, E_out).
    bound = 1.0 / math.sqrt(E)
    wt = jax.random.uniform(kw, (E, E), jnp.float32, -bound, bound)
    bs = jax.random.uniform(kb, (E,), jnp.float32, -bound, bound)
    return wt, bs

  wq, bq = init_linear(keys[1], keys[2])
  wk, bk = init_linear(keys[3], keys[4])
  wv, bv = init_linear(keys[5], keys[6])
  params = (wq, bq, wk, bk, wv, bv)
  # (query_global / key_global / value_global are unused on the
  #  attention_mask=None path and therefore not instantiated.)

  ref = _reference(x, params, num_heads=H, attention_window=attention_window)

  # 1) Strict f32 check: block_q=8 -> 2 query blocks per batch element,
  #    exercising the double-buffered K/V window DMA (prefetch + wait).
  out_f32, _ = longformer_local_attention(
      x, params, num_heads=H, attention_window=attention_window,
      block_q=8, matmul_dtype=None)
  out_f32 = jax.block_until_ready(out_f32)
  np.testing.assert_allclose(np.asarray(out_f32), np.asarray(ref),
                             rtol=2e-5, atol=2e-5)

  # 2) Default performance path: bf16 MXU operands with f32 accumulation
  #    (looser tolerance consistent with bf16 storage of Q/K/V and probs).
  out_bf16, _ = longformer_local_attention(
      x, params, num_heads=H, attention_window=attention_window, block_q=8)
  out_bf16 = jax.block_until_ready(out_bf16)
  np.testing.assert_allclose(np.asarray(out_bf16), np.asarray(ref),
                             rtol=5e-2, atol=5e-2)

  print("KERNEL_OK")
</pallas_src>

<mosaic_0001>
module attributes {stable_mosaic.version = 11 : i64} {
  func.func @_qkv_proj_kernel(%arg0: i32, %arg1: memref<32x32xf32, #tpu.memory_space<vmem>>, %arg2: memref<32x96xf32, #tpu.memory_space<vmem>>, %arg3: memref<1x96xf32, #tpu.memory_space<vmem>>, %arg4: memref<32x32xf32, #tpu.memory_space<vmem>>, %arg5: memref<32x32xf32, #tpu.memory_space<vmem>>, %arg6: memref<32x32xf32, #tpu.memory_space<vmem>>) attributes {dimension_semantics = [#tpu.dimension_semantics<parallel>], iteration_bounds = array<i64: 1>, scalar_prefetch = 0 : i64, scratch_operands = 0 : i64, tpu.core_type = #tpu.core_type<tc>, window_params = [{transform_indices = @transform_0, window_bounds = array<i64: 32, 32>}, {pipeline_mode = #tpu.pipeline_mode<synchronous>, transform_indices = @transform_1, window_bounds = array<i64: 32, 96>}, {pipeline_mode = #tpu.pipeline_mode<synchronous>, transform_indices = @transform_2, window_bounds = array<i64: 1, 96>}, {transform_indices = @transform_3, window_bounds = array<i64: 32, 32>}, {transform_indices = @transform_4, window_bounds = array<i64: 32, 32>}, {transform_indices = @transform_5, window_bounds = array<i64: 32, 32>}]} {
    %c0 = arith.constant 0 : index
    %c0_0 = arith.constant 0 : index
    %0 = vector.load %arg1[%c0, %c0_0] : memref<32x32xf32, #tpu.memory_space<vmem>>, vector<32x32xf32>
    %c0_1 = arith.constant 0 : index
    %c0_2 = arith.constant 0 : index
    %1 = vector.load %arg2[%c0_1, %c0_2] : memref<32x96xf32, #tpu.memory_space<vmem>>, vector<32x96xf32>
    %cst = arith.constant dense<0.000000e+00> : vector<32x96xf32>
    %2 = tpu.matmul %0, %1, %cst {dimension_numbers = #tpu.dot_dimension_numbers<[1], [0], [0], [1], [0, 0, 1, 1], [], []>} : vector<32x32xf32>, vector<32x96xf32>, vector<32x96xf32> -> vector<32x96xf32>
    %c0_3 = arith.constant 0 : index
    %c0_4 = arith.constant 0 : index
    %3 = vector.load %arg3[%c0_3, %c0_4] : memref<1x96xf32, #tpu.memory_space<vmem>>, vector<1x96xf32>
    %4 = vector.broadcast %3 : vector<1x96xf32> to vector<32x96xf32>
    %5 = arith.addf %2, %4 : vector<32x96xf32>
    %6 = vector.extract_strided_slice %5 {offsets = [0, 0], sizes = [32, 32], strides = [1, 1]} : vector<32x96xf32> to vector<32x32xf32>
    %c0_5 = arith.constant 0 : index
    %c0_6 = arith.constant 0 : index
    %7 = vector.load %arg4[%c0_5, %c0_6] : memref<32x32xf32, #tpu.memory_space<vmem>>, vector<32x32xf32>
    tpu.vector_store %arg4[%c0_5, %c0_6], %6 {strides = array<i32>} : memref<32x32xf32, #tpu.memory_space<vmem>>, vector<32x32xf32>,
    %8 = vector.extract_strided_slice %5 {offsets = [0, 32], sizes = [32, 32], strides = [1, 1]} : vector<32x96xf32> to vector<32x32xf32>
    %c0_7 = arith.constant 0 : index
    %c0_8 = arith.constant 0 : index
    %9 = vector.load %arg5[%c0_7, %c0_8] : memref<32x32xf32, #tpu.memory_space<vmem>>, vector<32x32xf32>
    tpu.vector_store %arg5[%c0_7, %c0_8], %8 {strides = array<i32>} : memref<32x32xf32, #tpu.memory_space<vmem>>, vector<32x32xf32>,
    %10 = vector.extract_strided_slice %5 {offsets = [0, 64], sizes = [32, 32], strides = [1, 1]} : vector<32x96xf32> to vector<32x32xf32>
    %c0_9 = arith.constant 0 : index
    %c0_10 = arith.constant 0 : index
    %11 = vector.load %arg6[%c0_9, %c0_10] : memref<32x32xf32, #tpu.memory_space<vmem>>, vector<32x32xf32>
    tpu.vector_store %arg6[%c0_9, %c0_10], %10 {strides = array<i32>} : memref<32x32xf32, #tpu.memory_space<vmem>>, vector<32x32xf32>,
    return
  }
  func.func @transform_0(%arg0: i32) -> (i32, i32) {
    %c0_i32 = arith.constant 0 : i32
    %c0_i32_0 = arith.constant 0 : i32
    return %arg0, %c0_i32 : i32, i32
  }
  func.func @transform_1(%arg0: i32) -> (i32, i32) {
    %c0_i32 = arith.constant 0 : i32
    %c0_i32_0 = arith.constant 0 : i32
    %c0_i32_1 = arith.constant 0 : i32
    return %c0_i32, %c0_i32_0 : i32, i32
  }
  func.func @transform_2(%arg0: i32) -> (i32, i32) {
    %c0_i32 = arith.constant 0 : i32
    %c0_i32_0 = arith.constant 0 : i32
    %c0_i32_1 = arith.constant 0 : i32
    return %c0_i32, %c0_i32_0 : i32, i32
  }
  func.func @transform_3(%arg0: i32) -> (i32, i32) {
    %c0_i32 = arith.constant 0 : i32
    %c0_i32_0 = arith.constant 0 : i32
    return %arg0, %c0_i32 : i32, i32
  }
  func.func @transform_4(%arg0: i32) -> (i32, i32) {
    %c0_i32 = arith.constant 0 : i32
    %c0_i32_0 = arith.constant 0 : i32
    return %arg0, %c0_i32 : i32, i32
  }
  func.func @transform_5(%arg0: i32) -> (i32, i32) {
    %c0_i32 = arith.constant 0 : i32
    %c0_i32_0 = arith.constant 0 : i32
    return %arg0, %c0_i32 : i32, i32
  }
}

</mosaic_0001>

<bundles_post_ra>
// kernel: tpu_custom_call.1
= control target key start
LH: loop header
LB: loop body
LE: loop exit
PB: predicated region body
PF: predicated region fallthrough
CT: control target
= control target key end

     0   :  { %11 = vsyncpa [#allocation3], 0  ;;  %s548_s0 = inlined_call_operand.hbm [shape: f32[32,32], index: 0, kind: input, shape index: {}]   ;;  %s549_s1 = inlined_call_operand.hbm [shape: f32[32,96], index: 1, kind: input, shape index: {}]   ;;  %s550_s2 = inlined_call_operand.vmem [shape: f32[1,96], index: 2, kind: input, shape index: {}]   ;;  %s551_s3 = inlined_call_operand.hbm [shape: f32[32,32], index: 3, kind: output, shape index: {0}]   ;;  %s552_s4 = inlined_call_operand.hbm [shape: f32[32,32], index: 4, kind: output, shape index: {1}]   ;;  %s553_s5 = inlined_call_operand.hbm [shape: f32[32,32], index: 5, kind: output, shape index: {2}]  }
   0x1   :  { %12 = vsyncpa [#allocation6], 0 }
   0x2   :  { %13 = vsyncpa [#allocation4], 0 }
   0x3   :  { %14 = vsyncpa [#allocation9], 0  ;;  %s415_s18 = smov [#allocation2]   ;;  %s297_s22 = scalar_lea.hbm %s548_s0, 512 }
   0x4   :  { %s20_s19 = sshll.u32 %s415_s18, 4  ;;  %p298_p0 = scmp.ne.s32.totalorder %s548_s0, %s297_s22  ;;  %s21_s19 = int_to_ptr.vmem [resolvable:$true] %s20_s19 }
   0x5   :  { %p301_p1 = scmp.lt.u32.totalorder %s297_s22, %s548_s0 }
   0x7   :  { %p303_p2 = pnand %p301_p1, %p298_p0 }
   0x9   :  { %306 = shalt.err (!%p303_p2)
}
   0xa   :  { %s307_s27 = scalar_lea.vmem %s21_s19, 512  ;;  %p312_p4 = scmp.lt.s32.totalorder %s21_s19, %s21_s19 }
   0xb   :  { %p308_p3 = scmp.ne.s32.totalorder %s21_s19, %s307_s27  ;;  %p313_p5 = scmp.lt.s32.totalorder %s307_s27, %s307_s27 }
   0xd   :  { %p314_p6 = por %p313_p5, %p312_p4 }
   0xf   :  { %p315_p7 = pnand %p314_p6, %p308_p3 }
  0x11   :  { %318 = shalt.err (!%p315_p7)
}
  0x12   :  { %s416_s28 = smov 128   ;;  %s417_s29 = smov 8  }
  0x13   :  { %26 = dma.hbm_to_vmem [thread:$0]  %s548_s0, 512, %s21_s19, [#allocation3], %s416_s28, %s416_s28, %s417_s29  }
  0x14   :  { %s418_s7 = smov [#allocation5]   ;;  %s319_s11 = scalar_lea.hbm %s549_s1, 512 }
  0x15   :  { %s32_s8 = sshll.u32 %s418_s7, 4  ;;  %p320_p8 = scmp.ne.s32.totalorder %s549_s1, %s319_s11  ;;  %s33_s8 = int_to_ptr.vmem [resolvable:$true] %s32_s8 }
  0x16   :  { %p323_p9 = scmp.lt.u32.totalorder %s319_s11, %s549_s1 }
  0x18   :  { %p325_p10 = pnand %p323_p9, %p320_p8 }
  0x1a   :  { %328 = shalt.err (!%p325_p10)
}
  0x1b   :  { %s329_s16 = scalar_lea.vmem %s33_s8, 512  ;;  %p334_p12 = scmp.lt.s32.totalorder %s33_s8, %s33_s8 }
  0x1c   :  { %p330_p11 = scmp.ne.s32.totalorder %s33_s8, %s329_s16  ;;  %p335_p13 = scmp.lt.s32.totalorder %s329_s16, %s329_s16 }
  0x1e   :  { %p336_p0 = por %p335_p13, %p334_p12 }
  0x20   :  { %p337_p1 = pnand %p336_p0, %p330_p11 }
  0x22   :  { %340 = shalt.err (!%p337_p1)
}
  0x23   :  { %38 = dma.hbm_to_vmem [thread:$0]  %s549_s1, 512, %s33_s8, [#allocation6], %s416_s28, %s416_s28, %s417_s29  }
  0x24   :  { %407 = dma.done.wait [#allocation3], 512  }
  0x25   :  { %408 = vsyncadd [#allocation3], 4294966784 }
  0x26   :  { %409 = dma.done.wait [#allocation6], 512  }
  0x27   :  { %410 = vsyncadd [#allocation6], 4294966784  ;;  %vm62_vm0 = vcmask 261120   ;;  %v51_v0 = vld [vmem:[#allocation5] sm:$0xff]  ;;  %v52_v1 = vld [vmem:[#allocation5 + $0x8] sm:$0xff]  ;;  %s419_s19 = smov [#allocation7]  }
  0x28   :  { %v53_v2 = vld [vmem:[#allocation5 + $0x10] sm:$0xff]  ;;  %v276_v3 = vpack.c.bf16 %v52_v1, %v51_v0  ;;  %v54_v4 = vld [vmem:[#allocation5 + $0x18] sm:$0xff]  ;;  %v47_v5 = vld [vmem:[#allocation2] sm:$0xff]  ;;  %s205_s20 = sshll.u32 %s419_s19, 4  ;;  %s420_s21 = smov 96   ;;  %s206_s20 = int_to_ptr.vmem [resolvable:$true] %s205_s20 }
  0x29   :  { %v49_v6 = vld [vmem:[#allocation2 + $0x10] sm:$0xff]  ;;  %v280_v7 = vpack.c.bf16 %v54_v4, %v53_v2  ;;  %270 = vmatprep.mubr.msk.f32.mxu0 %vm62_vm0, %v47_v5  ;;  %v48_v8 = vld [vmem:[#allocation2 + $0x8] sm:$0xff]  ;;  %v50_v9 = vld [vmem:[#allocation2 + $0x18] sm:$0xff]  ;;  %p346_p3 = scmp.lt.s32.totalorder %s206_s20, %s206_s20 }
  0x2a   :  { %273 = vmatprep.mubr.msk.f32.mxu1 %vm62_vm0, %v49_v6  ;;  %277 = vmatprep.subr.bf16.mxu0 %v276_v3  ;;  %v249_v10 = vld [vmem:[%s550_s2] ss:$0 sm:$0xff]  ;;  %s341_s2 = scalar_lea.vmem %s206_s20, 512 }
  0x2b   :  { %284 = vmatprep.subr.bf16.mxu1 %v276_v3  ;;  %279 = vmatpush3.bf16.msra.mxu0 %v276_v3  ;;  %p342_p2 = scmp.ne.s32.totalorder %s206_s20, %s341_s2  ;;  %p347_p4 = scmp.lt.s32.totalorder %s341_s2, %s341_s2 }
  0x2c   :  { %286 = vmatpush3.bf16.msra.mxu1 %v276_v3  ;;  %281 = vmatprep.subr.bf16.mxu0 %v280_v7 }
  0x2d   :  { %285 = vmatprep.subr.bf16.mxu1 %v280_v7  ;;  %p348_p5 = por %p347_p4, %p346_p3 }
  0x2f   :  { %283 = vmatpush3.bf16.msra.mxu0 %v280_v7  ;;  %p349_p6 = pnand %p348_p5, %p342_p2 }
  0x30   :  { %287 = vmatpush3.bf16.msra.mxu1 %v280_v7 }
  0x32   :  { %271 = vmatmul.mubr.msk.f32.vlgmr.msra.gmra.mrb[0].mxu0 %vm62_vm0, %v48_v8 }
  0x33   :  { %274 = vmatmul.mubr.msk.f32.vlgmr.msra.gmra.mrb[0].mxu1 %vm62_vm0, %v50_v9 }
 0x105   :  { %v272_v11 = vpop.f32.mrb[0].mxu0 }
 0x106   :  { %v275_v12 = vpop.f32.mrb[0].mxu1  ;;  %v147_v13 = vadd.f32 %v272_v11, %v249_v10  ;;  %v141_v15 = vpop.f32.mrb[1].mxu0 }
 0x107   :  { %v157_v14 = vadd.f32 %v275_v12, %v249_v10  ;;  %v151_v16 = vpop.f32.mrb[1].mxu1  ;;  %v142_v17 = vadd.f32 %v249_v10, %v141_v15 }
 0x108   :  { %v152_v18 = vadd.f32 %v249_v10, %v151_v16  ;;  %161 = vst.msk [vmem:[#allocation7 + $0x8] sm:$0xff] %vm62_vm0, %v147_v13  ;;  %170 = vrot.lane.b32.xlu0 %v147_v13, %s420_s21 }
 0x109   :  { %163 = vst.msk [vmem:[#allocation7 + $0x18] sm:$0xff] %vm62_vm0, %v157_v14  ;;  %174 = vrot.lane.b32.xlu1 %v157_v14, %s420_s21  ;;  %160 = vst.msk [vmem:[#allocation7] sm:$0xff] %vm62_vm0, %v142_v17 }
 0x10a   :  { %162 = vst.msk [vmem:[#allocation7 + $0x10] sm:$0xff] %vm62_vm0, %v152_v18 }
 0x10b   :  { %352 = shalt.err (!%p349_p6)
}
 0x10c   :  { %s353_s24 = scalar_lea.hbm %s551_s3, 512 }
 0x10d   :  { %p354_p7 = scmp.ne.s32.totalorder %s551_s3, %s353_s24  ;;  %p357_p8 = scmp.lt.u32.totalorder %s353_s24, %s551_s3 }
 0x10f   :  { %p359_p9 = pnand %p357_p8, %p354_p7 }
 0x111   :  { %362 = shalt.err (!%p359_p9)
}
 0x112   :  { %211 = dma.vmem_to_hbm [thread:$0]  %s206_s20, 512, %s551_s3, [#allocation4], %s416_s28, %s416_s28, %s417_s29  }
 0x113   :  { %s421_s8 = smov 64   ;;  %168 = vrot.lane.b32.xlu0 %v142_v17, %s420_s21  ;;  %s422_s9 = smov [#allocation8]  }
 0x114   :  { %186 = vrot.lane.b32.xlu1 %v147_v13, %s421_s8  ;;  %s217_s10 = sshll.u32 %s422_s9, 4  ;;  %s423_s3 = smov [#allocation10]   ;;  %s218_s10 = int_to_ptr.vmem [resolvable:$true] %s217_s10 }
 0x115   :  { %s229_s11 = sshll.u32 %s423_s3, 4  ;;  %s363_s12 = scalar_lea.vmem %s218_s10, 512  ;;  %s230_s11 = int_to_ptr.vmem [resolvable:$true] %s229_s11 }
 0x116   :  { %p364_p10 = scmp.ne.s32.totalorder %s218_s10, %s363_s12  ;;  %p368_p11 = scmp.lt.s32.totalorder %s218_s10, %s218_s10 }
 0x117   :  { %184 = vrot.lane.b32.xlu0 %v142_v17, %s421_s8  ;;  %p369_p12 = scmp.lt.s32.totalorder %s363_s12, %s363_s12 }
 0x118   :  { %172 = vrot.lane.b32.xlu1 %v152_v18, %s420_s21 }
 0x119   :  { %p370_p13 = por %p369_p12, %p368_p11 }
 0x11b   :  { %188 = vrot.lane.b32.xlu0 %v152_v18, %s421_s8  ;;  %p371_p0 = pnand %p370_p13, %p364_p10 }
 0x11c   :  { %190 = vrot.lane.b32.xlu1 %v157_v14, %s421_s8 }
 0x17a   :  { %v171_v20 = vpop.permute.xlu0 %170 }
 0x17b   :  { %v175_v19 = vpop.permute.xlu1 %174  ;;  %181 = vst.msk [vmem:[#allocation8 + $0x8] sm:$0xff] %vm62_vm0, %v171_v20 }
 0x17c   :  { %183 = vst.msk [vmem:[#allocation8 + $0x18] sm:$0xff] %vm62_vm0, %v175_v19 }
 0x185   :  { %v169_v22 = vpop.permute.xlu0 %168 }
 0x186   :  { %v187_v21 = vpop.permute.xlu1 %186  ;;  %180 = vst.msk [vmem:[#allocation8] sm:$0xff] %vm62_vm0, %v169_v22 }
 0x187   :  { %197 = vst.msk [vmem:[#allocation10 + $0x8] sm:$0xff] %vm62_vm0, %v187_v21 }
 0x189   :  { %v185_v24 = vpop.permute.xlu0 %184 }
 0x18a   :  { %v173_v23 = vpop.permute.xlu1 %172  ;;  %196 = vst.msk [vmem:[#allocation10] sm:$0xff] %vm62_vm0, %v185_v24 }
 0x18b   :  { %182 = vst.msk [vmem:[#allocation8 + $0x10] sm:$0xff] %vm62_vm0, %v173_v23 }
 0x18c   :  { %374 = shalt.err (!%p371_p0)
}
 0x18d   :  { %s375_s15 = scalar_lea.hbm %s552_s4, 512 }
 0x18e   :  { %p376_p1 = scmp.ne.s32.totalorder %s552_s4, %s375_s15  ;;  %p379_p2 = scmp.lt.u32.totalorder %s375_s15, %s552_s4 }
 0x190   :  { %p381_p3 = pnand %p379_p2, %p376_p1 }
 0x192   :  { %384 = shalt.err (!%p381_p3)
}
 0x193   :  { %223 = dma.vmem_to_hbm [thread:$0]  %s218_s10, 512, %s552_s4, [#allocation9], %s416_s28, %s416_s28, %s417_s29   ;;  %v191_v25 = vpop.permute.xlu1 %190  ;;  %v189_v26 = vpop.permute.xlu0 %188 }
 0x194   :  { %199 = vst.msk [vmem:[#allocation10 + $0x18] sm:$0xff] %vm62_vm0, %v191_v25  ;;  %198 = vst.msk [vmem:[#allocation10 + $0x10] sm:$0xff] %vm62_vm0, %v189_v26  ;;  %s385_s20 = scalar_lea.vmem %s230_s11, 512  ;;  %p390_p5 = scmp.lt.s32.totalorder %s230_s11, %s230_s11 }
 0x195   :  { %p386_p4 = scmp.ne.s32.totalorder %s230_s11, %s385_s20  ;;  %p391_p6 = scmp.lt.s32.totalorder %s385_s20, %s385_s20 }
 0x197   :  { %p392_p7 = por %p391_p6, %p390_p5 }
 0x199   :  { %p393_p8 = pnand %p392_p7, %p386_p4 }
 0x19b   :  { %396 = shalt.err (!%p393_p8)
}
 0x19c   :  { %s397_s22 = scalar_lea.hbm %s553_s5, 512 }
 0x19d   :  { %p398_p9 = scmp.ne.s32.totalorder %s553_s5, %s397_s22  ;;  %p401_p10 = scmp.lt.u32.totalorder %s397_s22, %s553_s5 }
 0x19f   :  { %p403_p11 = pnand %p401_p10, %p398_p9 }
 0x1a1   :  { %406 = shalt.err (!%p403_p11)
}
 0x1a2   :  { %235 = dma.vmem_to_hbm [thread:$0]  %s230_s11, 512, %s553_s5, [#allocation9], %s416_s28, %s416_s28, %s417_s29  }
 0x1a3   :  { %411 = dma.done.wait [#allocation4], 512  }
 0x1a4   :  { %412 = vsyncadd [#allocation4], 4294966784 }
 0x1a5   :  { %413 = dma.done.wait [#allocation9], 1024  }
 0x1a6   :  { %414 = vsyncadd [#allocation9], 4294966272 }
 0x1a7   :  { %245 = vsyncpa [#allocation3], 1 }
 0x1a8   :  { %246 = vsyncpa [#allocation6], 1 }
 0x1a9   :  { %247 = vsyncpa [#allocation4], 1 }
 0x1aa   :  { %248 = vsyncpa [#allocation9], 1 }

</bundles_post_ra>
